<compile_context>
chip_gen: v7x
topology: tpu7x:2x2x1
jax: 0.10.0
libtpu: 0.0.40
codegen_flags: <defaults>
</compile_context>

<pallas_src>
import functools

import jax
import jax.numpy as jnp
from jax.experimental import pallas as pl
from jax.experimental.pallas import tpu as pltpu

WIN_SIZE = 11
WIN_SIGMA = 1.5
K1, K2 = 0.01, 0.03
DATA_RANGE = 1.0
C1 = (K1 * DATA_RANGE) ** 2
C2 = (K2 * DATA_RANGE) ** 2

LANE = 128


def _round_up(x, m):
    return ((x + m - 1) // m) * m


def _gauss_1d(size=WIN_SIZE, sigma=WIN_SIGMA):
    coords = jnp.arange(size, dtype=jnp.float32) - (size // 2)
    g = jnp.exp(-(coords ** 2) / (2.0 * sigma ** 2))
    return g / jnp.sum(g)


def _band_matrices(H, W, wout_pad=None, win=WIN_SIZE):
    """Gh: (Hout, H) applies the valid 1D conv along rows (left-multiply).
       Gw: (W, wout_pad) applies it along cols (right-multiply); columns
       >= Wout are zero padding (for 128-lane alignment in the kernel)."""
    g = _gauss_1d(win)
    Hout, Wout = H - win + 1, W - win + 1
    if wout_pad is None:
        wout_pad = Wout
    idx_h = jnp.arange(H)[None, :] - jnp.arange(Hout)[:, None]            # (Hout, H)
    Gh = jnp.where((idx_h >= 0) & (idx_h < win),
                   g[jnp.clip(idx_h, 0, win - 1)], 0.0).astype(jnp.float32)
    jw = jnp.arange(wout_pad)[None, :]                                    # (1, wout_pad)
    idx_w = jnp.arange(W)[:, None] - jw                                   # (W, wout_pad)
    Gw = jnp.where((idx_w >= 0) & (idx_w < win) & (jw < Wout),
                   g[jnp.clip(idx_w, 0, win - 1)], 0.0).astype(jnp.float32)
    return Gh, Gw


def _vmem_capacity_bytes():
    """Per-core VMEM capacity; conservative fallback (v7x per-TC) if the
    trace-time query is unavailable."""
    try:
        cap = getattr(pltpu.get_tpu_info(), "vmem_capacity_bytes", None)
        if cap:
            return int(cap)
    except Exception:  # best-effort, trace-time only
        pass
    return 64 * 1024 * 1024


def _step_vmem_bytes(B, H, W, wout_pad, elem_bytes):
    """Estimated per-grid-step VMEM working set for a block of B planes."""
    Hout = H - WIN_SIZE + 1
    fixed = 2 * (Hout * H + W * wout_pad) * elem_bytes       # Gh, Gw (double-buffered)
    per_plane = (
        2 * 2 * H * W * elem_bytes                           # x, y blocks (double-buffered)
        + 2 * 5 * H * wout_pad * elem_bytes                  # staging + relayout scratches
        + 5 * Hout * wout_pad * 4                            # stage-2 result (f32)
        + 8 * Hout * wout_pad * 4                            # mu/sigma/num/den/ssim temps (f32)
    )
    return fixed + B * per_plane


def _pick_block(NC, H, W, wout_pad, elem_bytes, vmem_cap):
    """Planes per grid step: as many as fit in ~half the device VMEM, capped so
    the 'parallel' grid has >= 2 steps (both v7x TensorCores get work) and the
    unrolled relayout stays small."""
    budget = vmem_cap // 2
    fixed = _step_vmem_bytes(0, H, W, wout_pad, elem_bytes)
    per_plane = _step_vmem_bytes(1, H, W, wout_pad, elem_bytes) - fixed
    b = max(1, (budget - fixed) // per_plane)
    if NC >= 2:
        b = min(b, -(-NC // 2))          # guarantee G >= 2
    return int(max(1, min(NC, b, 32)))


def _ssim_block_kernel(x_ref, y_ref, gh_ref, gw_ref, out_ref, t_ref, u_ref):
    # Static shapes.
    Hout, H = gh_ref.shape
    W, Wout_pad = gw_ref.shape
    Wout = W - WIN_SIZE + 1
    B = x_ref.shape[0] // H              # planes in this block
    BH = B * H

    gh = gh_ref[...]                     # (Hout, H)      filter dtype
    gw = gw_ref[...]                     # (W, Wout_pad)  filter dtype (zero-padded cols)
    x = x_ref[...]                       # (B*H, W)       filter dtype
    y = y_ref[...]
    x32 = x.astype(jnp.float32)
    y32 = y.astype(jnp.float32)
    fdt = x.dtype

    # ---- Stage 1: W-direction Gaussian (valid conv). One dot per statistic,
    # written straight into the staging scratch (no concatenate). -----------
    stats = (x, y,
             (x32 * x32).astype(fdt),
             (y32 * y32).astype(fdt),
             (x32 * y32).astype(fdt))
    for s, p in enumerate(stats):
        t_ref[s * BH:(s + 1) * BH, :] = jnp.dot(
            p, gw, preferred_element_type=jnp.float32).astype(fdt)

    # ---- Relayout: (stat, plane) chunks move from sublanes to lanes. Every
    # chunk is Wout_pad (multiple of 128) lanes wide and copied ref->ref, so
    # the stores are unmasked and no large value stays live across the loop. -
    for c in range(5 * B):
        u_ref[:, c * Wout_pad:(c + 1) * Wout_pad] = t_ref[c * H:(c + 1) * H, :]

    # ---- Stage 2: H-direction Gaussian, one dot for all stats & planes. ----
    f = jnp.dot(gh, u_ref[...], preferred_element_type=jnp.float32)
    # f: (Hout, 5*B*Wout_pad), float32

    g = B * Wout_pad
    mu1 = f[:, 0 * g:1 * g]
    mu2 = f[:, 1 * g:2 * g]
    ex2 = f[:, 2 * g:3 * g]
    ey2 = f[:, 3 * g:4 * g]
    exy = f[:, 4 * g:5 * g]

    mu1_sq = mu1 * mu1
    mu2_sq = mu2 * mu2
    mu1_mu2 = mu1 * mu2
    sigma1_sq = ex2 - mu1_sq
    sigma2_sq = ey2 - mu2_sq
    sigma12 = exy - mu1_mu2

    # Single divide: (2*mu1*mu2+C1)(2*s12+C2) / ((mu1^2+mu2^2+C1)(s1+s2+C2)).
    num = (2.0 * mu1_mu2 + C1) * (2.0 * sigma12 + C2)
    den = (mu1_sq + mu2_sq + C1) * (sigma1_sq + sigma2_sq + C2)
    ssim_map = num / den                                   # (Hout, B*Wout_pad)

    # Mask the zero-padded lanes (their SSIM evaluates to exactly 1).
    col = jax.lax.broadcasted_iota(jnp.int32, ssim_map.shape, 1)
    valid = (col % Wout_pad) < Wout
    masked = jnp.where(valid, ssim_map, 0.0)

    part = jnp.sum(masked, axis=1, keepdims=True)          # (Hout, 1)
    part = jnp.sum(part, axis=0, keepdims=True)            # (1, 1)
    out_ref[...] = jnp.broadcast_to(part, (8, 128))        # (8,128)-aligned store


def simm_loss(cleaned_images, images, filter_dtype=jnp.float32):
    """1 - SSIM(cleaned_images, images); inputs (N, C, H, W), values in [0, 1].

    filter_dtype=jnp.bfloat16 runs the two Gaussian-filter matmuls on the MXU
    in bf16 (f32 accumulation) and halves input DMA; post-filter SSIM math is
    always f32.  Default f32 matches the PyTorch reference to ~1e-6.
    """
    N, C, H, W = cleaned_images.shape
    assert H >= WIN_SIZE and W >= WIN_SIZE, "spatial dims must be >= win_size"
    Hout, Wout = H - WIN_SIZE + 1, W - WIN_SIZE + 1
    Wout_pad = _round_up(Wout, LANE)
    NC = N * C

    elem_bytes = jnp.dtype(filter_dtype).itemsize
    vmem_cap = _vmem_capacity_bytes()
    B = _pick_block(NC, H, W, Wout_pad, elem_bytes, vmem_cap)
    G = -(-NC // B)                      # grid steps (plane-blocks)
    NCp = G * B
    pad = NCp - NC

    x = cleaned_images.reshape(NC, H, W).astype(filter_dtype)
    y = images.reshape(NC, H, W).astype(filter_dtype)
    if pad:
        # Zero planes have SSIM == 1 exactly on valid columns; corrected below.
        x = jnp.concatenate([x, jnp.zeros((pad, H, W), x.dtype)], axis=0)
        y = jnp.concatenate([y, jnp.zeros((pad, H, W), y.dtype)], axis=0)

    # Sublane-stack planes: each kernel block is B planes = (B*H, W) rows.
    x = x.reshape(NCp * H, W)
    y = y.reshape(NCp * H, W)

    Gh, Gw = _band_matrices(H, W, Wout_pad)
    Gh = Gh.astype(filter_dtype)
    Gw = Gw.astype(filter_dtype)

    need = _step_vmem_bytes(B, H, W, Wout_pad, elem_bytes)
    vmem_limit = int(max(32 * 1024 * 1024, min(2 * need, vmem_cap // 2)))

    partials = pl.pallas_call(
        _ssim_block_kernel,
        out_shape=jax.ShapeDtypeStruct((G * 8, 128), jnp.float32),
        grid_spec=pltpu.PrefetchScalarGridSpec(
            num_scalar_prefetch=0,
            grid=(G,),
            in_specs=[
                pl.BlockSpec((B * H, W), lambda i: (i, 0)),
                pl.BlockSpec((B * H, W), lambda i: (i, 0)),
                pl.BlockSpec((Hout, H), lambda i: (0, 0)),
                pl.BlockSpec((W, Wout_pad), lambda i: (0, 0)),
            ],
            out_specs=pl.BlockSpec((8, 128), lambda i: (i, 0)),
            scratch_shapes=[
                pltpu.VMEM((5 * B * H, Wout_pad), filter_dtype),   # stage-1 staging
                pltpu.VMEM((H, 5 * B * Wout_pad), filter_dtype),   # relayout buffer
            ],
        ),
        compiler_params=pltpu.CompilerParams(
            dimension_semantics=("parallel",),   # per-block partials, no accumulator
            vmem_limit_bytes=vmem_limit,
        ),
    )(x, y, Gh, Gw)

    total = jnp.sum(partials.reshape(G, 8, 128)[:, 0, 0])
    total = total - jnp.float32(pad * Hout * Wout)   # remove padded-plane SSIM (==1)
    mean_ssim = total / jnp.float32(NC * Hout * Wout)
    return 1.0 - mean_ssim


def _simm_loss_ref(cleaned_images, images, filter_dtype=jnp.float32):
    """Pure-JAX reference mirroring the kernel's filter dtype (no Pallas)."""
    N, C, H, W = cleaned_images.shape
    x = cleaned_images.reshape(N * C, H, W).astype(filter_dtype)
    y = images.reshape(N * C, H, W).astype(filter_dtype)
    x32 = x.astype(jnp.float32)
    y32 = y.astype(jnp.float32)
    Gh, Gw = _band_matrices(H, W)
    Gh = Gh.astype(filter_dtype)
    Gw = Gw.astype(filter_dtype)

    def gfilt(p):
        t = jnp.einsum('nhw,wb->nhb', p, Gw,
                       preferred_element_type=jnp.float32).astype(filter_dtype)
        return jnp.einsum('ah,nhb->nab', Gh, t,
                          preferred_element_type=jnp.float32)

    mu1, mu2 = gfilt(x), gfilt(y)
    s1 = gfilt((x32 * x32).astype(filter_dtype)) - mu1 ** 2
    s2 = gfilt((y32 * y32).astype(filter_dtype)) - mu2 ** 2
    s12 = gfilt((x32 * y32).astype(filter_dtype)) - mu1 * mu2
    cs = (2 * s12 + C2) / (s1 + s2 + C2)
    ssim_map = ((2 * mu1 * mu2 + C1) / (mu1 ** 2 + mu2 ** 2 + C1)) * cs
    return 1.0 - jnp.mean(ssim_map)


if __name__ == "__main__":
    key = jax.random.PRNGKey(0)
    k1, k2 = jax.random.split(key)
    N, C, H, W = 2, 4, 16, 16
    images = jax.random.uniform(k1, (N, C, H, W), dtype=jnp.float32)
    noise = 0.1 * jax.random.normal(k2, (N, C, H, W), dtype=jnp.float32)
    cleaned = jnp.clip(images + noise, 0.0, 1.0)

    # Exact (f32-filter) path: matches the f32 reference tightly.
    loss32 = jax.block_until_ready(jax.jit(simm_loss)(cleaned, images))
    ref32 = jax.block_until_ready(_simm_loss_ref(cleaned, images))
    assert jnp.allclose(loss32, ref32, atol=1e-5, rtol=1e-5), (loss32, ref32)

    # bf16 filter path (perf mode): validated against a bf16-matched reference,
    # plus a loose sanity bound against the exact value.
    bf16_fn = jax.jit(functools.partial(simm_loss, filter_dtype=jnp.bfloat16))
    loss16 = jax.block_until_ready(bf16_fn(cleaned, images))
    ref16 = jax.block_until_ready(_simm_loss_ref(cleaned, images, jnp.bfloat16))
    assert jnp.allclose(loss16, ref16, atol=2e-3, rtol=2e-3), (loss16, ref16)
    assert jnp.abs(loss16 - ref32) < 5e-2, (loss16, ref32)

    print("KERNEL_OK")
</pallas_src>

<mosaic_0001>
module attributes {stable_mosaic.version = 11 : i64} {
  func.func @_ssim_block_kernel(%arg0: i32, %arg1: memref<64x16xf32, #tpu.memory_space<vmem>>, %arg2: memref<64x16xf32, #tpu.memory_space<vmem>>, %arg3: memref<6x16xf32, #tpu.memory_space<vmem>>, %arg4: memref<16x128xf32, #tpu.memory_space<vmem>>, %arg5: memref<8x128xf32, #tpu.memory_space<vmem>>, %arg6: memref<320x128xf32, #tpu.memory_space<vmem>>, %arg7: memref<16x2560xf32, #tpu.memory_space<vmem>>) attributes {dimension_semantics = [#tpu.dimension_semantics<parallel>], iteration_bounds = array<i64: 2>, scalar_prefetch = 0 : i64, scratch_operands = 2 : i64, tpu.core_type = #tpu.core_type<tc>, window_params = [{transform_indices = @transform_0, window_bounds = array<i64: 64, 16>}, {transform_indices = @transform_1, window_bounds = array<i64: 64, 16>}, {pipeline_mode = #tpu.pipeline_mode<synchronous>, transform_indices = @transform_2, window_bounds = array<i64: 6, 16>}, {pipeline_mode = #tpu.pipeline_mode<synchronous>, transform_indices = @transform_3, window_bounds = array<i64: 16, 128>}, {transform_indices = @transform_4, window_bounds = array<i64: 8, 128>}]} {
    %c0 = arith.constant 0 : index
    %c0_0 = arith.constant 0 : index
    %0 = vector.load %arg3[%c0, %c0_0] : memref<6x16xf32, #tpu.memory_space<vmem>>, vector<6x16xf32>
    %c0_1 = arith.constant 0 : index
    %c0_2 = arith.constant 0 : index
    %1 = vector.load %arg4[%c0_1, %c0_2] : memref<16x128xf32, #tpu.memory_space<vmem>>, vector<16x128xf32>
    %c0_3 = arith.constant 0 : index
    %c0_4 = arith.constant 0 : index
    %2 = vector.load %arg1[%c0_3, %c0_4] : memref<64x16xf32, #tpu.memory_space<vmem>>, vector<64x16xf32>
    %c0_5 = arith.constant 0 : index
    %c0_6 = arith.constant 0 : index
    %3 = vector.load %arg2[%c0_5, %c0_6] : memref<64x16xf32, #tpu.memory_space<vmem>>, vector<64x16xf32>
    %4 = arith.mulf %2, %2 : vector<64x16xf32>
    %5 = arith.mulf %3, %3 : vector<64x16xf32>
    %6 = arith.mulf %2, %3 : vector<64x16xf32>
    %cst = arith.constant dense<0.000000e+00> : vector<64x128xf32>
    %7 = tpu.matmul %2, %1, %cst {dimension_numbers = #tpu.dot_dimension_numbers<[1], [0], [0], [1], [0, 0, 1, 1], [], []>} : vector<64x16xf32>, vector<16x128xf32>, vector<64x128xf32> -> vector<64x128xf32>
    %c0_7 = arith.constant 0 : index
    %c0_8 = arith.constant 0 : index
    %8 = vector.load %arg6[%c0_7, %c0_8] : memref<320x128xf32, #tpu.memory_space<vmem>>, vector<64x128xf32>
    tpu.vector_store %arg6[%c0_7, %c0_8], %7 {strides = array<i32>} : memref<320x128xf32, #tpu.memory_space<vmem>>, vector<64x128xf32>,
    %cst_9 = arith.constant dense<0.000000e+00> : vector<64x128xf32>
    %9 = tpu.matmul %3, %1, %cst_9 {dimension_numbers = #tpu.dot_dimension_numbers<[1], [0], [0], [1], [0, 0, 1, 1], [], []>} : vector<64x16xf32>, vector<16x128xf32>, vector<64x128xf32> -> vector<64x128xf32>
    %c64 = arith.constant 64 : index
    %c0_10 = arith.constant 0 : index
    %10 = vector.load %arg6[%c64, %c0_10] : memref<320x128xf32, #tpu.memory_space<vmem>>, vector<64x128xf32>
    tpu.vector_store %arg6[%c64, %c0_10], %9 {strides = array<i32>} : memref<320x128xf32, #tpu.memory_space<vmem>>, vector<64x128xf32>,
    %cst_11 = arith.constant dense<0.000000e+00> : vector<64x128xf32>
    %11 = tpu.matmul %4, %1, %cst_11 {dimension_numbers = #tpu.dot_dimension_numbers<[1], [0], [0], [1], [0, 0, 1, 1], [], []>} : vector<64x16xf32>, vector<16x128xf32>, vector<64x128xf32> -> vector<64x128xf32>
    %c128 = arith.constant 128 : index
    %c0_12 = arith.constant 0 : index
    %12 = vector.load %arg6[%c128, %c0_12] : memref<320x128xf32, #tpu.memory_space<vmem>>, vector<64x128xf32>
    tpu.vector_store %arg6[%c128, %c0_12], %11 {strides = array<i32>} : memref<320x128xf32, #tpu.memory_space<vmem>>, vector<64x128xf32>,
    %cst_13 = arith.constant dense<0.000000e+00> : vector<64x128xf32>
    %13 = tpu.matmul %5, %1, %cst_13 {dimension_numbers = #tpu.dot_dimension_numbers<[1], [0], [0], [1], [0, 0, 1, 1], [], []>} : vector<64x16xf32>, vector<16x128xf32>, vector<64x128xf32> -> vector<64x128xf32>
    %c192 = arith.constant 192 : index
    %c0_14 = arith.constant 0 : index
    %14 = vector.load %arg6[%c192, %c0_14] : memref<320x128xf32, #tpu.memory_space<vmem>>, vector<64x128xf32>
    tpu.vector_store %arg6[%c192, %c0_14], %13 {strides = array<i32>} : memref<320x128xf32, #tpu.memory_space<vmem>>, vector<64x128xf32>,
    %cst_15 = arith.constant dense<0.000000e+00> : vector<64x128xf32>
    %15 = tpu.matmul %6, %1, %cst_15 {dimension_numbers = #tpu.dot_dimension_numbers<[1], [0], [0], [1], [0, 0, 1, 1], [], []>} : vector<64x16xf32>, vector<16x128xf32>, vector<64x128xf32> -> vector<64x128xf32>
    %c256 = arith.constant 256 : index
    %c0_16 = arith.constant 0 : index
    %16 = vector.load %arg6[%c256, %c0_16] : memref<320x128xf32, #tpu.memory_space<vmem>>, vector<64x128xf32>
    tpu.vector_store %arg6[%c256, %c0_16], %15 {strides = array<i32>} : memref<320x128xf32, #tpu.memory_space<vmem>>, vector<64x128xf32>,
    %c0_17 = arith.constant 0 : index
    %c0_18 = arith.constant 0 : index
    %17 = vector.load %arg6[%c0_17, %c0_18] : memref<320x128xf32, #tpu.memory_space<vmem>>, vector<16x128xf32>
    %c0_19 = arith.constant 0 : index
    %c0_20 = arith.constant 0 : index
    %18 = vector.load %arg7[%c0_19, %c0_20] : memref<16x2560xf32, #tpu.memory_space<vmem>>, vector<16x128xf32>
    tpu.vector_store %arg7[%c0_19, %c0_20], %17 {strides = array<i32>} : memref<16x2560xf32, #tpu.memory_space<vmem>>, vector<16x128xf32>,
    %c16 = arith.constant 16 : index
    %c0_21 = arith.constant 0 : index
    %19 = vector.load %arg6[%c16, %c0_21] : memref<320x128xf32, #tpu.memory_space<vmem>>, vector<16x128xf32>
    %c0_22 = arith.constant 0 : index
    %c128_23 = arith.constant 128 : index
    %20 = vector.load %arg7[%c0_22, %c128_23] : memref<16x2560xf32, #tpu.memory_space<vmem>>, vector<16x128xf32>
    tpu.vector_store %arg7[%c0_22, %c128_23], %19 {strides = array<i32>} : memref<16x2560xf32, #tpu.memory_space<vmem>>, vector<16x128xf32>,
    %c32 = arith.constant 32 : index
    %c0_24 = arith.constant 0 : index
    %21 = vector.load %arg6[%c32, %c0_24] : memref<320x128xf32, #tpu.memory_space<vmem>>, vector<16x128xf32>
    %c0_25 = arith.constant 0 : index
    %c256_26 = arith.constant 256 : index
    %22 = vector.load %arg7[%c0_25, %c256_26] : memref<16x2560xf32, #tpu.memory_space<vmem>>, vector<16x128xf32>
    tpu.vector_store %arg7[%c0_25, %c256_26], %21 {strides = array<i32>} : memref<16x2560xf32, #tpu.memory_space<vmem>>, vector<16x128xf32>,
    %c48 = arith.constant 48 : index
    %c0_27 = arith.constant 0 : index
    %23 = vector.load %arg6[%c48, %c0_27] : memref<320x128xf32, #tpu.memory_space<vmem>>, vector<16x128xf32>
    %c0_28 = arith.constant 0 : index
    %c384 = arith.constant 384 : index
    %24 = vector.load %arg7[%c0_28, %c384] : memref<16x2560xf32, #tpu.memory_space<vmem>>, vector<16x128xf32>
    tpu.vector_store %arg7[%c0_28, %c384], %23 {strides = array<i32>} : memref<16x2560xf32, #tpu.memory_space<vmem>>, vector<16x128xf32>,
    %c64_29 = arith.constant 64 : index
    %c0_30 = arith.constant 0 : index
    %25 = vector.load %arg6[%c64_29, %c0_30] : memref<320x128xf32, #tpu.memory_space<vmem>>, vector<16x128xf32>
    %c0_31 = arith.constant 0 : index
    %c512 = arith.constant 512 : index
    %26 = vector.load %arg7[%c0_31, %c512] : memref<16x2560xf32, #tpu.memory_space<vmem>>, vector<16x128xf32>
    tpu.vector_store %arg7[%c0_31, %c512], %25 {strides = array<i32>} : memref<16x2560xf32, #tpu.memory_space<vmem>>, vector<16x128xf32>,
    %c80 = arith.constant 80 : index
    %c0_32 = arith.constant 0 : index
    %27 = vector.load %arg6[%c80, %c0_32] : memref<320x128xf32, #tpu.memory_space<vmem>>, vector<16x128xf32>
    %c0_33 = arith.constant 0 : index
    %c640 = arith.constant 640 : index
    %28 = vector.load %arg7[%c0_33, %c640] : memref<16x2560xf32, #tpu.memory_space<vmem>>, vector<16x128xf32>
    tpu.vector_store %arg7[%c0_33, %c640], %27 {strides = array<i32>} : memref<16x2560xf32, #tpu.memory_space<vmem>>, vector<16x128xf32>,
    %c96 = arith.constant 96 : index
    %c0_34 = arith.constant 0 : index
    %29 = vector.load %arg6[%c96, %c0_34] : memref<320x128xf32, #tpu.memory_space<vmem>>, vector<16x128xf32>
    %c0_35 = arith.constant 0 : index
    %c768 = arith.constant 768 : index
    %30 = vector.load %arg7[%c0_35, %c768] : memref<16x2560xf32, #tpu.memory_space<vmem>>, vector<16x128xf32>
    tpu.vector_store %arg7[%c0_35, %c768], %29 {strides = array<i32>} : memref<16x2560xf32, #tpu.memory_space<vmem>>, vector<16x128xf32>,
    %c112 = arith.constant 112 : index
    %c0_36 = arith.constant 0 : index
    %31 = vector.load %arg6[%c112, %c0_36] : memref<320x128xf32, #tpu.memory_space<vmem>>, vector<16x128xf32>
    %c0_37 = arith.constant 0 : index
    %c896 = arith.constant 896 : index
    %32 = vector.load %arg7[%c0_37, %c896] : memref<16x2560xf32, #tpu.memory_space<vmem>>, vector<16x128xf32>
    tpu.vector_store %arg7[%c0_37, %c896], %31 {strides = array<i32>} : memref<16x2560xf32, #tpu.memory_space<vmem>>, vector<16x128xf32>,
    %c128_38 = arith.constant 128 : index
    %c0_39 = arith.constant 0 : index
    %33 = vector.load %arg6[%c128_38, %c0_39] : memref<320x128xf32, #tpu.memory_space<vmem>>, vector<16x128xf32>
    %c0_40 = arith.constant 0 : index
    %c1024 = arith.constant 1024 : index
    %34 = vector.load %arg7[%c0_40, %c1024] : memref<16x2560xf32, #tpu.memory_space<vmem>>, vector<16x128xf32>
    tpu.vector_store %arg7[%c0_40, %c1024], %33 {strides = array<i32>} : memref<16x2560xf32, #tpu.memory_space<vmem>>, vector<16x128xf32>,
    %c144 = arith.constant 144 : index
    %c0_41 = arith.constant 0 : index
    %35 = vector.load %arg6[%c144, %c0_41] : memref<320x128xf32, #tpu.memory_space<vmem>>, vector<16x128xf32>
    %c0_42 = arith.constant 0 : index
    %c1152 = arith.constant 1152 : index
    %36 = vector.load %arg7[%c0_42, %c1152] : memref<16x2560xf32, #tpu.memory_space<vmem>>, vector<16x128xf32>
    tpu.vector_store %arg7[%c0_42, %c1152], %35 {strides = array<i32>} : memref<16x2560xf32, #tpu.memory_space<vmem>>, vector<16x128xf32>,
    %c160 = arith.constant 160 : index
    %c0_43 = arith.constant 0 : index
    %37 = vector.load %arg6[%c160, %c0_43] : memref<320x128xf32, #tpu.memory_space<vmem>>, vector<16x128xf32>
    %c0_44 = arith.constant 0 : index
    %c1280 = arith.constant 1280 : index
    %38 = vector.load %arg7[%c0_44, %c1280] : memref<16x2560xf32, #tpu.memory_space<vmem>>, vector<16x128xf32>
    tpu.vector_store %arg7[%c0_44, %c1280], %37 {strides = array<i32>} : memref<16x2560xf32, #tpu.memory_space<vmem>>, vector<16x128xf32>,
    %c176 = arith.constant 176 : index
    %c0_45 = arith.constant 0 : index
    %39 = vector.load %arg6[%c176, %c0_45] : memref<320x128xf32, #tpu.memory_space<vmem>>, vector<16x128xf32>
    %c0_46 = arith.constant 0 : index
    %c1408 = arith.constant 1408 : index
    %40 = vector.load %arg7[%c0_46, %c1408] : memref<16x2560xf32, #tpu.memory_space<vmem>>, vector<16x128xf32>
    tpu.vector_store %arg7[%c0_46, %c1408], %39 {strides = array<i32>} : memref<16x2560xf32, #tpu.memory_space<vmem>>, vector<16x128xf32>,
    %c192_47 = arith.constant 192 : index
    %c0_48 = arith.constant 0 : index
    %41 = vector.load %arg6[%c192_47, %c0_48] : memref<320x128xf32, #tpu.memory_space<vmem>>, vector<16x128xf32>
    %c0_49 = arith.constant 0 : index
    %c1536 = arith.constant 1536 : index
    %42 = vector.load %arg7[%c0_49, %c1536] : memref<16x2560xf32, #tpu.memory_space<vmem>>, vector<16x128xf32>
    tpu.vector_store %arg7[%c0_49, %c1536], %41 {strides = array<i32>} : memref<16x2560xf32, #tpu.memory_space<vmem>>, vector<16x128xf32>,
    %c208 = arith.constant 208 : index
    %c0_50 = arith.constant 0 : index
    %43 = vector.load %arg6[%c208, %c0_50] : memref<320x128xf32, #tpu.memory_space<vmem>>, vector<16x128xf32>
    %c0_51 = arith.constant 0 : index
    %c1664 = arith.constant 1664 : index
    %44 = vector.load %arg7[%c0_51, %c1664] : memref<16x2560xf32, #tpu.memory_space<vmem>>, vector<16x128xf32>
    tpu.vector_store %arg7[%c0_51, %c1664], %43 {strides = array<i32>} : memref<16x2560xf32, #tpu.memory_space<vmem>>, vector<16x128xf32>,
    %c224 = arith.constant 224 : index
    %c0_52 = arith.constant 0 : index
    %45 = vector.load %arg6[%c224, %c0_52] : memref<320x128xf32, #tpu.memory_space<vmem>>, vector<16x128xf32>
    %c0_53 = arith.constant 0 : index
    %c1792 = arith.constant 1792 : index
    %46 = vector.load %arg7[%c0_53, %c1792] : memref<16x2560xf32, #tpu.memory_space<vmem>>, vector<16x128xf32>
    tpu.vector_store %arg7[%c0_53, %c1792], %45 {strides = array<i32>} : memref<16x2560xf32, #tpu.memory_space<vmem>>, vector<16x128xf32>,
    %c240 = arith.constant 240 : index
    %c0_54 = arith.constant 0 : index
    %47 = vector.load %arg6[%c240, %c0_54] : memref<320x128xf32, #tpu.memory_space<vmem>>, vector<16x128xf32>
    %c0_55 = arith.constant 0 : index
    %c1920 = arith.constant 1920 : index
    %48 = vector.load %arg7[%c0_55, %c1920] : memref<16x2560xf32, #tpu.memory_space<vmem>>, vector<16x128xf32>
    tpu.vector_store %arg7[%c0_55, %c1920], %47 {strides = array<i32>} : memref<16x2560xf32, #tpu.memory_space<vmem>>, vector<16x128xf32>,
    %c256_56 = arith.constant 256 : index
    %c0_57 = arith.constant 0 : index
    %49 = vector.load %arg6[%c256_56, %c0_57] : memref<320x128xf32, #tpu.memory_space<vmem>>, vector<16x128xf32>
    %c0_58 = arith.constant 0 : index
    %c2048 = arith.constant 2048 : index
    %50 = vector.load %arg7[%c0_58, %c2048] : memref<16x2560xf32, #tpu.memory_space<vmem>>, vector<16x128xf32>
    tpu.vector_store %arg7[%c0_58, %c2048], %49 {strides = array<i32>} : memref<16x2560xf32, #tpu.memory_space<vmem>>, vector<16x128xf32>,
    %c272 = arith.constant 272 : index
    %c0_59 = arith.constant 0 : index
    %51 = vector.load %arg6[%c272, %c0_59] : memref<320x128xf32, #tpu.memory_space<vmem>>, vector<16x128xf32>
    %c0_60 = arith.constant 0 : index
    %c2176 = arith.constant 2176 : index
    %52 = vector.load %arg7[%c0_60, %c2176] : memref<16x2560xf32, #tpu.memory_space<vmem>>, vector<16x128xf32>
    tpu.vector_store %arg7[%c0_60, %c2176], %51 {strides = array<i32>} : memref<16x2560xf32, #tpu.memory_space<vmem>>, vector<16x128xf32>,
    %c288 = arith.constant 288 : index
    %c0_61 = arith.constant 0 : index
    %53 = vector.load %arg6[%c288, %c0_61] : memref<320x128xf32, #tpu.memory_space<vmem>>, vector<16x128xf32>
    %c0_62 = arith.constant 0 : index
    %c2304 = arith.constant 2304 : index
    %54 = vector.load %arg7[%c0_62, %c2304] : memref<16x2560xf32, #tpu.memory_space<vmem>>, vector<16x128xf32>
    tpu.vector_store %arg7[%c0_62, %c2304], %53 {strides = array<i32>} : memref<16x2560xf32, #tpu.memory_space<vmem>>, vector<16x128xf32>,
    %c304 = arith.constant 304 : index
    %c0_63 = arith.constant 0 : index
    %55 = vector.load %arg6[%c304, %c0_63] : memref<320x128xf32, #tpu.memory_space<vmem>>, vector<16x128xf32>
    %c0_64 = arith.constant 0 : index
    %c2432 = arith.constant 2432 : index
    %56 = vector.load %arg7[%c0_64, %c2432] : memref<16x2560xf32, #tpu.memory_space<vmem>>, vector<16x128xf32>
    tpu.vector_store %arg7[%c0_64, %c2432], %55 {strides = array<i32>} : memref<16x2560xf32, #tpu.memory_space<vmem>>, vector<16x128xf32>,
    %c0_65 = arith.constant 0 : index
    %c0_66 = arith.constant 0 : index
    %57 = vector.load %arg7[%c0_65, %c0_66] : memref<16x2560xf32, #tpu.memory_space<vmem>>, vector<16x2560xf32>
    %cst_67 = arith.constant dense<0.000000e+00> : vector<6x2560xf32>
    %58 = tpu.matmul %0, %57, %cst_67 {dimension_numbers = #tpu.dot_dimension_numbers<[1], [0], [0], [1], [0, 0, 1, 1], [], []>} : vector<6x16xf32>, vector<16x2560xf32>, vector<6x2560xf32> -> vector<6x2560xf32>
    %59 = vector.extract_strided_slice %58 {offsets = [0, 0], sizes = [6, 512], strides = [1, 1]} : vector<6x2560xf32> to vector<6x512xf32>
    %60 = vector.extract_strided_slice %58 {offsets = [0, 512], sizes = [6, 512], strides = [1, 1]} : vector<6x2560xf32> to vector<6x512xf32>
    %61 = vector.extract_strided_slice %58 {offsets = [0, 1024], sizes = [6, 512], strides = [1, 1]} : vector<6x2560xf32> to vector<6x512xf32>
    %62 = vector.extract_strided_slice %58 {offsets = [0, 1536], sizes = [6, 512], strides = [1, 1]} : vector<6x2560xf32> to vector<6x512xf32>
    %63 = vector.extract_strided_slice %58 {offsets = [0, 2048], sizes = [6, 512], strides = [1, 1]} : vector<6x2560xf32> to vector<6x512xf32>
    %64 = arith.mulf %59, %59 : vector<6x512xf32>
    %65 = arith.mulf %60, %60 : vector<6x512xf32>
    %66 = arith.mulf %59, %60 : vector<6x512xf32>
    %67 = arith.subf %61, %64 : vector<6x512xf32>
    %68 = arith.subf %62, %65 : vector<6x512xf32>
    %69 = arith.subf %63, %66 : vector<6x512xf32>
    %cst_68 = arith.constant 2.000000e+00 : f32
    %70 = vector.broadcast %cst_68 : f32 to vector<6x512xf32>
    %71 = arith.mulf %70, %66 : vector<6x512xf32>
    %cst_69 = arith.constant 9.99999974E-5 : f32
    %72 = vector.broadcast %cst_69 : f32 to vector<6x512xf32>
    %73 = arith.addf %71, %72 : vector<6x512xf32>
    %cst_70 = arith.constant 2.000000e+00 : f32
    %74 = vector.broadcast %cst_70 : f32 to vector<6x512xf32>
    %75 = arith.mulf %74, %69 : vector<6x512xf32>
    %cst_71 = arith.constant 8.99999984E-4 : f32
    %76 = vector.broadcast %cst_71 : f32 to vector<6x512xf32>
    %77 = arith.addf %75, %76 : vector<6x512xf32>
    %78 = arith.mulf %73, %77 : vector<6x512xf32>
    %79 = arith.addf %64, %65 : vector<6x512xf32>
    %cst_72 = arith.constant 9.99999974E-5 : f32
    %80 = vector.broadcast %cst_72 : f32 to vector<6x512xf32>
    %81 = arith.addf %79, %80 : vector<6x512xf32>
    %82 = arith.addf %67, %68 : vector<6x512xf32>
    %cst_73 = arith.constant 8.99999984E-4 : f32
    %83 = vector.broadcast %cst_73 : f32 to vector<6x512xf32>
    %84 = arith.addf %82, %83 : vector<6x512xf32>
    %85 = arith.mulf %81, %84 : vector<6x512xf32>
    %86 = arith.divf %78, %85 : vector<6x512xf32>
    %87 = tpu.iota {dimensions = array<i32: 1>} : vector<6x512xi32>
    %c128_i32 = arith.constant 128 : i32
    %c0_i32 = arith.constant 0 : i32
    %88 = arith.cmpi eq, %c128_i32, %c0_i32 : i32
    %c1_i32 = arith.constant 1 : i32
    %89 = arith.select %88, %c1_i32, %c128_i32 : i32
    %90 = vector.broadcast %89 : i32 to vector<6x512xi32>
    %91 = arith.remsi %87, %90 : vector<6x512xi32>
    %c0_i32_74 = arith.constant 0 : i32
    %92 = vector.broadcast %c0_i32_74 : i32 to vector<6x512xi32>
    %93 = arith.cmpi ne, %91, %92 : vector<6x512xi32>
    %c0_i32_75 = arith.constant 0 : i32
    %94 = vector.broadcast %c0_i32_75 : i32 to vector<6x512xi32>
    %95 = arith.cmpi slt, %91, %94 : vector<6x512xi32>
    %c0_i32_76 = arith.constant 0 : i32
    %96 = arith.cmpi slt, %89, %c0_i32_76 : i32
    %97 = vector.broadcast %96 : i1 to vector<6x512xi1>
    %98 = vector.broadcast %97 : vector<6x512xi1> to vector<6x512xi1>
    %99 = arith.xori %95, %98 : vector<6x512xi1>
    %100 = arith.andi %99, %93 : vector<6x512xi1>
    %101 = vector.broadcast %89 : i32 to vector<6x512xi32>
    %102 = arith.addi %91, %101 : vector<6x512xi32>
    %103 = arith.select %100, %102, %91 : vector<6x512xi1>, vector<6x512xi32>
    %c6_i32 = arith.constant 6 : i32
    %104 = vector.broadcast %c6_i32 : i32 to vector<6x512xi32>
    %105 = arith.cmpi slt, %103, %104 : vector<6x512xi32>
    %cst_77 = arith.constant 0.000000e+00 : f32
    %106 = vector.broadcast %cst_77 : f32 to vector<6x512xf32>
    %107 = arith.select %105, %86, %106 : vector<6x512xi1>, vector<6x512xf32>
    %cst_78 = arith.constant dense<0.000000e+00> : vector<6xf32>
    %108 = vector.multi_reduction <add>, %107, %cst_78 [1] : vector<6x512xf32> to vector<6xf32>
    %109 = vector.shape_cast %108 : vector<6xf32> to vector<6x1xf32>
    %cst_79 = arith.constant dense<0.000000e+00> : vector<1xf32>
    %110 = vector.multi_reduction <add>, %109, %cst_79 [0] : vector<6x1xf32> to vector<1xf32>
    %111 = vector.shape_cast %110 : vector<1xf32> to vector<1x1xf32>
    %112 = vector.shape_cast %111 : vector<1x1xf32> to vector<1x1xf32>
    %113 = vector.broadcast %112 : vector<1x1xf32> to vector<8x128xf32>
    %c0_80 = arith.constant 0 : index
    %c0_81 = arith.constant 0 : index
    %114 = vector.load %arg5[%c0_80, %c0_81] : memref<8x128xf32, #tpu.memory_space<vmem>>, vector<8x128xf32>
    tpu.vector_store %arg5[%c0_80, %c0_81], %113 {strides = array<i32>} : memref<8x128xf32, #tpu.memory_space<vmem>>, vector<8x128xf32>,
    return
  }
  func.func @transform_0(%arg0: i32) -> (i32, i32) {
    %c0_i32 = arith.constant 0 : i32
    %c0_i32_0 = arith.constant 0 : i32
    return %arg0, %c0_i32 : i32, i32
  }
  func.func @transform_1(%arg0: i32) -> (i32, i32) {
    %c0_i32 = arith.constant 0 : i32
    %c0_i32_0 = arith.constant 0 : i32
    return %arg0, %c0_i32 : i32, i32
  }
  func.func @transform_2(%arg0: i32) -> (i32, i32) {
    %c0_i32 = arith.constant 0 : i32
    %c0_i32_0 = arith.constant 0 : i32
    %c0_i32_1 = arith.constant 0 : i32
    return %c0_i32, %c0_i32_0 : i32, i32
  }
  func.func @transform_3(%arg0: i32) -> (i32, i32) {
    %c0_i32 = arith.constant 0 : i32
    %c0_i32_0 = arith.constant 0 : i32
    %c0_i32_1 = arith.constant 0 : i32
    return %c0_i32, %c0_i32_0 : i32, i32
  }
  func.func @transform_4(%arg0: i32) -> (i32, i32) {
    %c0_i32 = arith.constant 0 : i32
    %c0_i32_0 = arith.constant 0 : i32
    return %arg0, %c0_i32 : i32, i32
  }
}

</mosaic_0001>

<bundles_post_ra>
// kernel: simm_loss.1
= control target key start
LH: loop header
LB: loop body
LE: loop exit
PB: predicated region body
PF: predicated region fallthrough
CT: control target
= control target key end

     0   :  { %s2301_s15 = smov 0   ;;  %s2471_s0 = inlined_call_operand.vmem [shape: f32[128,16], index: 0, kind: input, shape index: {}]   ;;  %s2472_s1 = inlined_call_operand.vmem [shape: f32[128,16], index: 1, kind: input, shape index: {}]   ;;  %s2473_s2 = inlined_call_operand.vmem [shape: f32[6,16], index: 2, kind: input, shape index: {}]   ;;  %s2474_s3 = inlined_call_operand.vmem [shape: f32[16,128], index: 3, kind: input, shape index: {}]   ;;  %s2475_s4 = inlined_call_operand.vmem [shape: f32[16,128], index: 4, kind: output, shape index: {}]  }
   0x1 LB: > { %s2307_s16 = sadd.s32 4294967295, %s2273_s15   ;;  %p2002_p0 = scmp.ge.s32.totalorder %s2273_s15, 1  ;;  %s2273_s15 = sphi %s2301_s15, %s14_s15  }
   0x2   : > { %p174_p1 = scmp.lt.s32.totalorder %s2273_s15, 3 }
   0x4   : > { %p175_p2 = pnand %p2002_p0, %p174_p1 }
   0x5   : > { %v221_v0 = vld [vmem:[%s2474_s3] sm:$0xff] (!%p175_p2)  ;;  %v222_v1 = vld [vmem:[%s2474_s3 + $0x8] sm:$0xff] (!%p175_p2)  ;;  %s2003_s21 = sshll.u32 (!%p175_p2), %s2307_s16, 3  ;;  %vm263_vm0 = vcmask (!%p175_p2), 130048   ;;  %v2275_v43 = vmov (!%p175_p2), 0.0   ;;  %vm1915_vm3 = vcmask (!%p175_p2), 1045504  }
   0x6   : > { %178 = sbr.rel (%p175_p2) target bundleno = 665 (0x299), region = 36  ;;  %v2318_v2 = vpack.c.bf16 (!%p175_p2), %v222_v1, %v221_v0  ;;  %p205_p3 = scmp.lt.s32.totalorder (!%p175_p2), %s2003_s21, 15  ;;  %v2413_v58 = vld [vmem:[%s2473_s2] sm:$0x3f] (!%p175_p2) }
   0x7   : > { %p216_p4 = scmp.lt.s32.totalorder (!%p175_p2), %s2307_s16, 1 }
   0x8   : > { %2191 = vmatprep.subr.bf16.mxu0 (!%p175_p2), %v2318_v2  ;;  %2195 = vmatprep.subr.bf16.mxu1 (!%p175_p2), %v2318_v2 }
   0x9   : > { %2193 = vmatpush3.bf16.msra.mxu0 (!%p175_p2), %v2318_v2  ;;  %2197 = vmatpush3.bf16.msra.mxu1 (!%p175_p2), %v2318_v2 }
   0xa   : > { %2199 = vmatprep.subr.bf16.mxu0 (!%p175_p2), %v2318_v2  ;;  %2203 = vmatprep.subr.bf16.mxu1 (!%p175_p2), %v2318_v2 }
   0xd   : > { %s2479_s21 = smov (!%p205_p3, %s2003_s21), 15  ;;  %s2481_s16 = smov (!%p216_p4, %s2307_s16), 1 }
   0xe   : > { %s2004_s22 = sshll.u32 %s2479_s21, 3  ;;  %s2007_s5 = sshll.u32 %s2481_s16, 3 }
   0xf   : > { %s2329_s25 = scalar_lea.vmem %s2471_s0, %s2004_s22  ;;  %s2334_s28 = scalar_lea.vmem %s2472_s1, %s2004_s22 }
  0x10   : > { %v223_v3 = vld [vmem:[%s2329_s25] sm:$0xff]  ;;  %v2338_v4 = vld [vmem:[%s2329_s25 + $0x8] sm:$0xff]  ;;  %v2341_v5 = vld [vmem:[%s2329_s25 + $0x10] sm:$0xff]  ;;  %s219_s8 = scalar_lea.vmem %s2475_s4, %s2007_s5 }
  0x11   : > { %2114 = vmatprep.mubr.msk.f32.mxu0 %vm263_vm0, %v223_v3  ;;  %v231_v6 = vld [vmem:[%s2334_s28] sm:$0xff]  ;;  %v232_v7 = vld [vmem:[%s2334_s28 + $0x8] sm:$0xff]  ;;  %v233_v8 = vld [vmem:[%s2334_s28 + $0x10] sm:$0xff]  ;;  %v239_v17 = vmul.f32 %v223_v3, %v223_v3  ;;  %v240_v21 = vmul.f32 %v2338_v4, %v2338_v4  ;;  %v241_v22 = vmul.f32 %v2341_v5, %v2341_v5 }
  0x12   : > { %2115 = vmatmul.mubr.msk.f32.vlgmr.msra.gmra.mrb[0].mxu0 %vm263_vm0, %v2338_v4  ;;  %2130 = vmatprep.mubr.msk.f32.mxu1 %vm263_vm0, %v231_v6  ;;  %v226_v9 = vld [vmem:[%s2329_s25 + $0x18] sm:$0xff]  ;;  %v227_v10 = vld [vmem:[%s2329_s25 + $0x20] sm:$0xff]  ;;  %v228_v13 = vld [vmem:[%s2329_s25 + $0x28] sm:$0xff]  ;;  %v247_v19 = vmul.f32 %v231_v6, %v231_v6  ;;  %v248_v23 = vmul.f32 %v232_v7, %v232_v7  ;;  %v249_v24 = vmul.f32 %v233_v8, %v233_v8 }
  0x13   : > { %2117 = vmatprep.mubr.msk.f32.mxu0 %vm263_vm0, %v2341_v5  ;;  %2131 = vmatmul.mubr.msk.f32.vlgmr.msra.gmra.mrb[0].mxu1 %vm263_vm0, %v232_v7  ;;  %v234_v11 = vld [vmem:[%s2334_s28 + $0x18] sm:$0xff]  ;;  %v235_v12 = vld [vmem:[%s2334_s28 + $0x20] sm:$0xff]  ;;  %v229_v14 = vld [vmem:[%s2329_s25 + $0x30] sm:$0xff]  ;;  %v242_v25 = vmul.f32 %v226_v9, %v226_v9  ;;  %v243_v26 = vmul.f32 %v227_v10, %v227_v10  ;;  %v244_v29 = vmul.f32 %v228_v13, %v228_v13 }
  0x14   : > { %2133 = vmatprep.mubr.msk.f32.mxu1 %vm263_vm0, %v233_v8  ;;  %2201 = vmatpush3.bf16.msra.mxu0 %v2318_v2  ;;  %v236_v15 = vld [vmem:[%s2334_s28 + $0x28] sm:$0xff]  ;;  %v237_v16 = vld [vmem:[%s2334_s28 + $0x30] sm:$0xff]  ;;  %v230_v18 = vld [vmem:[%s2329_s25 + $0x38] sm:$0xff]  ;;  %v250_v27 = vmul.f32 %v234_v11, %v234_v11  ;;  %v251_v28 = vmul.f32 %v235_v12, %v235_v12  ;;  %v245_v30 = vmul.f32 %v229_v14, %v229_v14 }
  0x15   : > { %2205 = vmatpush3.bf16.msra.mxu1 %v2318_v2  ;;  %2207 = vmatprep.subr.bf16.mxu0 %v2318_v2  ;;  %v238_v20 = vld [vmem:[%s2334_s28 + $0x38] sm:$0xff]  ;;  %v252_v31 = vmul.f32 %v236_v15, %v236_v15  ;;  %v253_v32 = vmul.f32 %v237_v16, %v237_v16  ;;  %v246_v33 = vmul.f32 %v230_v18, %v230_v18 }
  0x16   : > { %2118 = vmatmul.mubr.msk.f32.gmra.mrb[2].mxu0 %vm263_vm0, %v226_v9  ;;  %v255_v34 = vmul.f32 %v231_v6, %v223_v3  ;;  %v254_v35 = vmul.f32 %v238_v20, %v238_v20  ;;  %v256_v36 = vmul.f32 %v232_v7, %v2338_v4  ;;  %v257_v37 = vmul.f32 %v233_v8, %v2341_v5 }
  0x17   : > { %2120 = vmatprep.mubr.msk.f32.mxu0 %vm263_vm0, %v227_v10  ;;  %2134 = vmatmul.mubr.msk.f32.gmra.mrb[2].mxu1 %vm263_vm0, %v234_v11  ;;  %v258_v38 = vmul.f32 %v234_v11, %v226_v9  ;;  %v259_v39 = vmul.f32 %v235_v12, %v227_v10  ;;  %v260_v40 = vmul.f32 %v236_v15, %v228_v13 }
  0x18   : > { %2136 = vmatprep.mubr.msk.f32.mxu1 %vm263_vm0, %v235_v12  ;;  %v261_v41 = vmul.f32 %v237_v16, %v229_v14  ;;  %v262_v42 = vmul.f32 %v238_v20, %v230_v18 }
  0x1a   : > { %2121 = vmatmul.mubr.msk.f32.gmra.mrb[4].mxu0 %vm263_vm0, %v228_v13 }
  0x1b   : > { %2123 = vmatprep.mubr.msk.f32.mxu0 %vm263_vm0, %v229_v14  ;;  %2137 = vmatmul.mubr.msk.f32.gmra.mrb[4].mxu1 %vm263_vm0, %v236_v15 }
  0x1c   : > { %2139 = vmatprep.mubr.msk.f32.mxu1 %vm263_vm0, %v237_v16 }
  0x1e   : > { %2124 = vmatmul.mubr.msk.f32.gmra.mrb[6].mxu0 %vm263_vm0, %v230_v18 }
  0x1f   : > { %2146 = vmatprep.mubr.msk.f32.mxu0 %vm263_vm0, %v239_v17  ;;  %2140 = vmatmul.mubr.msk.f32.gmra.mrb[6].mxu1 %vm263_vm0, %v238_v20 }
  0x20   : > { %2162 = vmatprep.mubr.msk.f32.mxu1 %vm263_vm0, %v247_v19 }
  0x22   : > { %2147 = vmatmul.mubr.msk.f32.vlgmr.msra.gmra.mrb[8].mxu0 %vm263_vm0, %v240_v21 }
  0x23   : > { %2149 = vmatprep.mubr.msk.f32.mxu0 %vm263_vm0, %v241_v22  ;;  %2163 = vmatmul.mubr.msk.f32.vlgmr.msra.gmra.mrb[8].mxu1 %vm263_vm0, %v248_v23 }
  0x24   : > { %2165 = vmatprep.mubr.msk.f32.mxu1 %vm263_vm0, %v249_v24  ;;  %2209 = vmatpush3.bf16.msra.mxu0 %v2318_v2 }
  0x26   : > { %2150 = vmatmul.mubr.msk.f32.gmra.mrb[10].mxu0 %vm263_vm0, %v242_v25 }
  0x27   : > { %2152 = vmatprep.mubr.msk.f32.mxu0 %vm263_vm0, %v243_v26  ;;  %2166 = vmatmul.mubr.msk.f32.gmra.mrb[10].mxu1 %vm263_vm0, %v250_v27 }
  0x28   : > { %2168 = vmatprep.mubr.msk.f32.mxu1 %vm263_vm0, %v251_v28 }
  0x2a   : > { %2153 = vmatmul.mubr.msk.f32.gmra.mrb[12].mxu0 %vm263_vm0, %v244_v29 }
  0x2b   : > { %2155 = vmatprep.mubr.msk.f32.mxu0 %vm263_vm0, %v245_v30  ;;  %2169 = vmatmul.mubr.msk.f32.gmra.mrb[12].mxu1 %vm263_vm0, %v252_v31 }
  0x2c   : > { %2171 = vmatprep.mubr.msk.f32.mxu1 %vm263_vm0, %v253_v32 }
  0x2e   : > { %2156 = vmatmul.mubr.msk.f32.gmra.mrb[14].mxu0 %vm263_vm0, %v246_v33 }
  0x2f   : > { %2178 = vmatprep.mubr.msk.f32.mxu0 %vm263_vm0, %v255_v34  ;;  %2172 = vmatmul.mubr.msk.f32.gmra.mrb[14].mxu1 %vm263_vm0, %v254_v35 }
  0x30   : > { %1136 = vmatprep.mubr.f32.mxu1 %v2275_v43 }
  0x32   : > { %2179 = vmatmul.mubr.msk.f32.vlgmr.msra.gmra.mrb[16].mxu0 %vm263_vm0, %v256_v36 }
  0x33   : > { %2181 = vmatprep.mubr.msk.f32.mxu0 %vm263_vm0, %v257_v37 }
  0x36   : > { %2182 = vmatmul.mubr.msk.f32.gmra.mrb[18].mxu0 %vm263_vm0, %v258_v38 }
  0x37   : > { %2184 = vmatprep.mubr.msk.f32.mxu0 %vm263_vm0, %v259_v39 }
  0x3a   : > { %2185 = vmatmul.mubr.msk.f32.gmra.mrb[20].mxu0 %vm263_vm0, %v260_v40 }
  0x3b   : > { %2187 = vmatprep.mubr.msk.f32.mxu0 %vm263_vm0, %v261_v41 }
  0x3e   : > { %2188 = vmatmul.mubr.msk.f32.gmra.mrb[22].mxu0 %vm263_vm0, %v262_v42 }
  0x3f   : > { %1420 = vmatprep.mubr.f32.mxu0 %v2275_v43 }
  0xe5   : > { %v2116_v44 = vpop.f32.mrb[0].mxu0 }
  0xe6   : > { %v354_v45 = vpop.f32.mrb[1].mxu0  ;;  %v2132_v46 = vpop.f32.mrb[0].mxu1 }
  0xe7   : > { %v2212_v47 = vpack.c.bf16 %v2116_v44, %v354_v45  ;;  %v491_v48 = vpop.f32.mrb[1].mxu1 }
  0xe8   : > { %v2220_v49 = vpack.c.bf16 %v2132_v46, %v491_v48 }
  0xe9   : > { %v2119_v50 = vpop.f32.mrb[2].mxu0 }
  0xea   : > { %v364_v51 = vpop.f32.mrb[3].mxu0  ;;  %v2135_v52 = vpop.f32.mrb[2].mxu1 }
  0xeb   : > { %v2210_v53 = vpack.c.bf16 %v2119_v50, %v364_v51  ;;  %v501_v54 = vpop.f32.mrb[3].mxu1 }
  0xec   : > { %v2218_v55 = vpack.c.bf16 %v2135_v52, %v501_v54 }
  0xed   : > { %v2122_v56 = vpop.f32.mrb[4].mxu0  ;;  %2211 = vmatprep.subr.bf16.mxu1 %v2210_v53 }
  0xee   : > { %v374_v57 = vpop.f32.mrb[5].mxu0  ;;  %2213 = vmatpush1.bf16.msra.mxu1 %v2212_v47  ;;  %v2138_v59 = vpop.f32.mrb[4].mxu1 }
  0xef   : > { %v2216_v60 = vpack.c.bf16 %v2122_v56, %v374_v57  ;;  %v511_v61 = vpop.f32.mrb[5].mxu1 }
  0xf0   : > { %v2224_v62 = vpack.c.bf16 %v2138_v59, %v511_v61 }
  0xf1   : > { %v2125_v63 = vpop.f32.mrb[6].mxu0  ;;  %2048 = vmatmul.mubr.msk.f32.vlgmr.msra.gmra.mrb[16].mxu1 %vm263_vm0, %v2413_v58 }
  0xf2   : > { %v384_v0 = vpop.f32.mrb[7].mxu0  ;;  %v2141_v1 = vpop.f32.mrb[6].mxu1  ;;  %1207 = vmatprep.mubr.f32.mxu1 %v2275_v43 }
  0xf3   : > { %v2214_v2 = vpack.c.bf16 %v2125_v63, %v384_v0  ;;  %v521_v3 = vpop.f32.mrb[7].mxu1 }
  0xf4   : > { %v2222_v4 = vpack.c.bf16 %v2141_v1, %v521_v3 }
  0xf5   : > { %v2148_v5 = vpop.f32.mrb[8].mxu0  ;;  %2215 = vmatprep.subr.bf16.mxu1 %v2214_v2 }
  0xf6   : > { %v628_v6 = vpop.f32.mrb[9].mxu0  ;;  %2217 = vmatpush1.bf16.msra.mxu1 %v2216_v60  ;;  %v2164_v7 = vpop.f32.mrb[8].mxu1 }
  0xf7   : > { %v2228_v8 = vpack.c.bf16 %v2148_v5, %v628_v6  ;;  %2219 = vmatprep.subr.bf16.mxu1 %v2218_v55  ;;  %v765_v9 = vpop.f32.mrb[9].mxu1 }
  0xf8   : > { %v2236_v10 = vpack.c.bf16 %v2164_v7, %v765_v9 }
  0xf9   : > { %v2151_v11 = vpop.f32.mrb[10].mxu0  ;;  %2049 = vmatmul.mubr.msk.f32.vlgmr.msra.gmra.mrb[18].mxu1 %vm263_vm0, %v2413_v58 }
  0xfa   : > { %v638_v12 = vpop.f32.mrb[11].mxu0  ;;  %2221 = vmatpush1.bf16.msra.mxu1 %v2220_v49  ;;  %v2167_v13 = vpop.f32.mrb[10].mxu1  ;;  %1278 = vmatprep.mubr.f32.mxu1 %v2275_v43 }
  0xfb   : > { %v2226_v14 = vpack.c.bf16 %v2151_v11, %v638_v12  ;;  %2223 = vmatprep.subr.bf16.mxu1 %v2222_v4  ;;  %v775_v15 = vpop.f32.mrb[11].mxu1  ;;  %v1854_v12 = vlaneseq }
  0xfc   : > { %v2234_v16 = vpack.c.bf16 %v2167_v13, %v775_v15 }
  0xfd   : > { %2227 = vmatprep.subr.bf16.mxu0 %v2226_v14  ;;  %2050 = vmatmul.mubr.msk.f32.vlgmr.msra.gmra.mrb[20].mxu1 %vm263_vm0, %v2413_v58  ;;  %v2154_v17 = vpop.f32.mrb[12].mxu0 }
  0xfe   : > { %2225 = vmatpush1.bf16.msra.mxu1 %v2224_v62  ;;  %2229 = vmatpush1.bf16.msra.mxu0 %v2228_v8  ;;  %v648_v18 = vpop.f32.mrb[13].mxu0  ;;  %v2170_v19 = vpop.f32.mrb[12].mxu1 }
  0xff   : > { %v2232_v20 = vpack.c.bf16 %v2154_v17, %v648_v18  ;;  %2235 = vmatprep.subr.bf16.mxu0 %v2234_v16  ;;  %1349 = vmatprep.mubr.f32.mxu1 %v2275_v43  ;;  %v785_v21 = vpop.f32.mrb[13].mxu1 }
 0x100   : > { %v2240_v22 = vpack.c.bf16 %v2170_v19, %v785_v21 }
 0x101   : > { %v2157_v23 = vpop.f32.mrb[14].mxu0  ;;  %2052 = vmatmul.mubr.msk.f32.vlgmr.msra.gmra.mrb[24].mxu0 %vm263_vm0, %v2413_v58  ;;  %2051 = vmatmul.mubr.msk.f32.vlgmr.msra.gmra.mrb[22].mxu1 %vm263_vm0, %v2413_v58 }
 0x102   : > { %v658_v24 = vpop.f32.mrb[15].mxu0  ;;  %2237 = vmatpush1.bf16.msra.mxu0 %v2236_v10  ;;  %1562 = vmatprep.mubr.f32.mxu0 %v2275_v43  ;;  %v2173_v25 = vpop.f32.mrb[14].mxu1 }
 0x103   : > { %v2230_v26 = vpack.c.bf16 %v2157_v23, %v658_v24  ;;  %v795_v27 = vpop.f32.mrb[15].mxu1  ;;  %1491 = vmatprep.mubr.f32.mxu1 %v2275_v43  ;;  %v1855_v23 = vand.u32 127, %v1854_v12 }
 0x104   : > { %v2238_v28 = vpack.c.bf16 %v2173_v25, %v795_v27 }
 0x105   : > { %2231 = vmatprep.subr.bf16.mxu1 %v2230_v26  ;;  %2054 = vmatmul.mubr.msk.f32.vlgmr.msra.gmra.mrb[26].mxu0 %vm263_vm0, %v2413_v58  ;;  %v2180_v29 = vpop.f32.mrb[16].mxu0  ;;  %vm1907_vm1 = vcmp.lt.s32.totalorder %v1855_v23, 6 }
 0x106   : > { %2233 = vmatpush1.bf16.msra.mxu1 %v2232_v20  ;;  %v902_v30 = vpop.f32.mrb[17].mxu0  ;;  %1704 = vmatprep.mubr.f32.mxu0 %v2275_v43 }
 0x107   : > { %v2244_v31 = vpack.c.bf16 %v2180_v29, %v902_v30  ;;  %2239 = vmatprep.subr.bf16.mxu1 %v2238_v28  ;;  %v1856_v30 = vadd.s32 128, %v1855_v23 }
 0x109   : > { %v2183_v32 = vpop.f32.mrb[18].mxu0  ;;  %2053 = vmatmul.mubr.msk.f32.vlgmr.msra.gmra.mrb[24].mxu1 %vm263_vm0, %v2413_v58 }
 0x10a   : > { %v912_v33 = vpop.f32.mrb[19].mxu0  ;;  %2241 = vmatpush1.bf16.msra.mxu1 %v2240_v22  ;;  %1633 = vmatprep.mubr.f32.mxu1 %v2275_v43 }
 0x10b   : > { %v2242_v34 = vpack.c.bf16 %v2183_v32, %v912_v33 }
 0x10d   : > { %2055 = vmatmul.mubr.msk.f32.vlgmr.msra.gmra.mrb[26].mxu1 %vm263_vm0, %v2413_v58  ;;  %2243 = vmatprep.subr.bf16.mxu0 %v2242_v34  ;;  %v2186_v35 = vpop.f32.mrb[20].mxu0 }
 0x10e   : > { %2245 = vmatpush1.bf16.msra.mxu0 %v2244_v31  ;;  %v922_v36 = vpop.f32.mrb[21].mxu0  ;;  %1775 = vmatprep.mubr.f32.mxu1 %v2275_v43 }
 0x10f   : > { %v2248_v37 = vpack.c.bf16 %v2186_v35, %v922_v36 }
 0x111   : > { %v2189_v38 = vpop.f32.mrb[22].mxu0  ;;  %2056 = vmatmul.mubr.msk.f32.vlgmr.msra.gmra.mrb[28].mxu0 %vm263_vm0, %v2413_v58 }
 0x112   : > { %v932_v39 = vpop.f32.mrb[23].mxu0 }
 0x113   : > { %v2246_v40 = vpack.c.bf16 %v2189_v38, %v932_v39 }
 0x115   : > { %2247 = vmatprep.subr.bf16.mxu1 %v2246_v40 }
 0x116   : > { %2249 = vmatpush1.bf16.msra.mxu1 %v2248_v37 }
 0x119   : > { %2057 = vmatmul.mubr.msk.f32.vlgmr.msra.gmra.mrb[28].mxu1 %vm263_vm0, %v2413_v58 }
 0x1c4   : > { %v1138_v41 = vpop.f32.mrb[16].mxu1 }
 0x1c5   : > { %v1140_v42 = vpop.f32.mrb[17].mxu1  ;;  %v1782_v47 = vmul.f32 %v1138_v41, %v1138_v41 }
 0x1c6   : > { %v1783_v50 = vmul.f32 %v1140_v42, %v1140_v42 }
 0x1cc   : > { %v1209_v44 = vpop.f32.mrb[18].mxu1 }
 0x1cd   : > { %v1211_v45 = vpop.f32.mrb[19].mxu1  ;;  %v1784_v57 = vmul.f32 %v1209_v44, %v1209_v44 }
 0x1ce   : > { %v1785_v0 = vmul.f32 %v1211_v45, %v1211_v45 }
 0x1d0   : > { %v1280_v46 = vpop.f32.mrb[20].mxu1 }
 0x1d1   : > { %v1786_v48 = vmul.f32 %v1280_v46, %v1280_v46  ;;  %v1790_v43 = vmul.f32 %v1280_v46, %v1138_v41  ;;  %v1282_v49 = vpop.f32.mrb[21].mxu1 }
 0x1d2   : > { %v1787_v51 = vmul.f32 %v1282_v49, %v1282_v49  ;;  %v1791_v52 = vmul.f32 %v1282_v49, %v1140_v42 }
 0x1d3   : > { %v1826_v53 = vadd.f32 %v1786_v48, %v1782_v47  ;;  %v1806_v31 = vmul.f32 2.0, %v1790_v43 }
 0x1d4   : > { %v1827_v54 = vadd.f32 %v1787_v51, %v1783_v50  ;;  %v1422_v55 = vpop.f32.mrb[24].mxu0  ;;  %v1351_v56 = vpop.f32.mrb[22].mxu1  ;;  %v1807_v36 = vmul.f32 2.0, %v1791_v52 }
 0x1d5   : > { %v1794_v59 = vsub.f32 %v1422_v55, %v1782_v47  ;;  %v1424_v60 = vpop.f32.mrb[25].mxu0  ;;  %v1788_v58 = vmul.f32 %v1351_v56, %v1351_v56  ;;  %v1353_v61 = vpop.f32.mrb[23].mxu1  ;;  %v2443_v63 = vmul.f32 %v1351_v56, %v1209_v44  ;;  %v1830_v13 = vadd.f32 0.0001, %v1826_v53 }
 0x1d6   : > { %v1795_v62 = vsub.f32 %v1424_v60, %v1783_v50  ;;  %v1789_v2 = vmul.f32 %v1353_v61, %v1353_v61  ;;  %v2445_v3 = vmul.f32 %v1353_v61, %v1211_v45  ;;  %v1831_v17 = vadd.f32 0.0001, %v1827_v54 }
 0x1d7   : > { %v1828_v1 = vadd.f32 %v1788_v58, %v1784_v57  ;;  %v1870_v45 = vand.u32 127, %v1856_v30  ;;  %v1810_v46 = vadd.f32 0.0001, %v1806_v31  ;;  %v1857_v55 = vadd.s32 256, %v1855_v23 }
 0x1d8   : > { %v1564_v4 = vpop.f32.mrb[26].mxu0  ;;  %v1829_v5 = vadd.f32 %v1789_v2, %v1785_v0  ;;  %v1808_v56 = vmul.f32 2.0, %v2443_v63  ;;  %v1809_v61 = vmul.f32 2.0, %v2445_v3 }
 0x1d9   : > { %v1798_v6 = vsub.f32 %v1564_v4, %v1786_v48  ;;  %v1566_v7 = vpop.f32.mrb[27].mxu0  ;;  %v1832_v32 = vadd.f32 0.0001, %v1828_v1  ;;  %v1811_v48 = vadd.f32 0.0001, %v1807_v36  ;;  %vm2447_vm2 = vcmp.lt.s32.totalorder %v1870_v45, 6 }
 0x1da   : > { %v1799_v8 = vsub.f32 %v1566_v7, %v1787_v51  ;;  %v1833_v37 = vadd.f32 0.0001, %v1829_v5  ;;  %v1877_v5 = vand.u32 127, %v1857_v55 }
 0x1db   : > { %v1834_v9 = vadd.f32 %v1798_v6, %v1794_v59 }
 0x1dc   : > { %v1835_v10 = vadd.f32 %v1799_v8, %v1795_v62  ;;  %v1493_v11 = vpop.f32.mrb[24].mxu1  ;;  %v1812_v8 = vadd.f32 0.0001, %v1808_v56  ;;  %vm1909_vm4 = vcmp.lt.s32.totalorder %v1877_v5, 6 }
 0x1dd   : > { %v1838_v14 = vadd.f32 0.0009, %v1834_v9  ;;  %v1796_v15 = vsub.f32 %v1493_v11, %v1784_v57  ;;  %v1495_v16 = vpop.f32.mrb[25].mxu1  ;;  %v1813_v11 = vadd.f32 0.0001, %v1809_v61 }
 0x1de   : > { %v1839_v18 = vadd.f32 0.0009, %v1835_v10  ;;  %v1797_v19 = vsub.f32 %v1495_v16, %v1785_v0 }
 0x1df   : > { %v1842_v20 = vmul.f32 %v1838_v14, %v1830_v13 }
 0x1e0   : > { %v1843_v21 = vmul.f32 %v1839_v18, %v1831_v17  ;;  %v1635_v22 = vpop.f32.mrb[26].mxu1 }
 0x1e1   : > { %2259 = vrcp.f32 %v1842_v20  ;;  %v1800_v24 = vsub.f32 %v1635_v22, %v1788_v58  ;;  %v1637_v25 = vpop.f32.mrb[27].mxu1  ;;  %v1858_v58 = vadd.s32 384, %v1855_v23 }
 0x1e2   : > { %2261 = vrcp.f32 %v1843_v21  ;;  %v1801_v26 = vsub.f32 %v1637_v25, %v1789_v2 }
 0x1e3   : > { %v1836_v27 = vadd.f32 %v1800_v24, %v1796_v15 }
 0x1e4   : > { %v1837_v28 = vadd.f32 %v1801_v26, %v1797_v19  ;;  %v1706_v29 = vpop.f32.mrb[28].mxu0 }
 0x1e5   : > { %v1840_v33 = vadd.f32 0.0009, %v1836_v27  ;;  %v1802_v34 = vsub.f32 %v1706_v29, %v1790_v43  ;;  %v1708_v35 = vpop.f32.mrb[29].mxu0 }
 0x1e6   : > { %v1841_v38 = vadd.f32 0.0009, %v1837_v28  ;;  %v1803_v39 = vsub.f32 %v1708_v35, %v1791_v52 }
 0x1e7   : > { %v1844_v40 = vmul.f32 %v1840_v33, %v1832_v32  ;;  %v1814_v41 = vmul.f32 2.0, %v1802_v34 }
 0x1e8   : > { %v1845_v42 = vmul.f32 %v1841_v38, %v1833_v37  ;;  %v1815_v44 = vmul.f32 2.0, %v1803_v39 }
 0x1e9   : > { %2263 = vrcp.f32 %v1844_v40  ;;  %v1818_v47 = vadd.f32 0.0009, %v1814_v41 }
 0x1ea   : > { %2265 = vrcp.f32 %v1845_v42  ;;  %v1819_v49 = vadd.f32 0.0009, %v1815_v44 }
 0x1eb   : > { %v2260_v50 = vpop.eup %2259  ;;  %v1822_v51 = vmul.f32 %v1818_v47, %v1810_v46 }
 0x1ec   : > { %v2262_v43 = vpop.eup %2261  ;;  %v1823_v53 = vmul.f32 %v1819_v49, %v1811_v48  ;;  %v1777_v54 = vpop.f32.mrb[28].mxu1 }
 0x1ed   : > { %v1847_v57 = vmul.f32 %v2260_v50, %v1822_v51  ;;  %v1804_v59 = vsub.f32 %v1777_v54, %v2443_v63  ;;  %v1779_v60 = vpop.f32.mrb[29].mxu1  ;;  %v1884_v63 = vand.u32 127, %v1858_v58 }
 0x1ee   : > { %v1849_v62 = vmul.f32 %v2262_v43, %v1823_v53  ;;  %v1805_v0 = vsub.f32 %v1779_v60, %v2445_v3 }
 0x1ef   : > { %v1816_v1 = vmul.f32 2.0, %v1804_v59  ;;  %v1911_v2 = vsel %vm1907_vm1, %v1847_v57, 0.0  ;;  %vm1910_vm5 = vcmp.lt.s32.totalorder %v1884_v63, 6 }
 0x1f0   : > { %v1817_v4 = vmul.f32 2.0, %v1805_v0  ;;  %v1912_v6 = vsel %vm2447_vm2, %v1849_v62, 0.0  ;;  %v1916_v7 = vsel %vm1915_vm3, %v1911_v2, 0.0 }
 0x1f1   : > { %v1820_v9 = vadd.f32 0.0009, %v1816_v1  ;;  %v1917_v10 = vsel %vm1915_vm3, %v1912_v6, 0.0 }
 0x1f2   : > { %v1821_v12 = vadd.f32 0.0009, %v1817_v4  ;;  %v1918_v13 = vadd.f32 %v1917_v10, %v1916_v7 }
 0x1f3   : > { %v2264_v3 = vpop.eup %2263  ;;  %v1824_v14 = vmul.f32 %v1820_v9, %v1812_v8 }
 0x1f4   : > { %v2266_v15 = vpop.eup %2265  ;;  %v1825_v16 = vmul.f32 %v1821_v12, %v1813_v11 }
 0x1f5   : > { %v1851_v17 = vmul.f32 %v2264_v3, %v1824_v14 }
 0x1f6   : > { %v1853_v18 = vmul.f32 %v2266_v15, %v1825_v16 }
 0x1f7   : > { %v1913_v19 = vsel %vm1909_vm4, %v1851_v17, 0.0 }
 0x1f8   : > { %v1914_v20 = vsel %vm1910_vm5, %v1853_v18, 0.0  ;;  %v1919_v21 = vsel %vm1915_vm3, %v1913_v19, 0.0 }
 0x1f9   : > { %v1920_v22 = vadd.f32 %v1919_v21, %v1918_v13  ;;  %v1921_v23 = vsel %vm1915_vm3, %v1914_v20, 0.0 }
 0x1fb   : > { %v1922_v24 = vadd.f32 %v1921_v23, %v1920_v22 }
 0x1fd   : > { %1923 = vadd.xlane.f32.xlu0 %v1922_v24 }
 0x28a   : > { %v1924_v25 = vpop.xlane.xlu0 %1923 }
 0x28b   : > { %v1925_v26 = vsel %vm1915_vm3, %v1924_v25, 0.0 }
 0x28c   : > { %v1926_v27 = vrot.slane %v1925_v26, 4 }
 0x28e   : > { %v1927_v28 = vadd.f32 %v1926_v27, %v1925_v26 }
 0x290   : > { %v1928_v29 = vrot.slane %v1927_v28, 2 }
 0x292   : > { %v1929_v30 = vadd.f32 %v1928_v29, %v1927_v28 }
 0x294   : > { %v1930_v31 = vrot.slane %v1929_v30, 1 }
 0x296   : > { %v1931_v32 = vadd.f32 %v1930_v31, %v1929_v30 }
 0x298   : > { %1932 = vst [vmem:[%s219_s8] sm:$0xff] %v1931_v32 }
 0x299 PF: > { %s14_s15 = sadd.s32 1, %s2273_s15  }
 0x29a   : > { %p11_p5 = scmp.ge.s32.totalorder %s14_s15, 4  }
 0x29c   :  { %13 = sbr.rel (!%p11_p5) target bundleno = 1 (0x1), region = 69 }

</bundles_post_ra>
